<compile_context>
chip_gen: v7x
topology: tpu7x:2x2x1
jax: 0.10.0
libtpu: 0.0.40
codegen_flags: <defaults>
</compile_context>

<pallas_src>
import functools

import jax
import jax.numpy as jnp
from jax.experimental import pallas as pl
from jax.experimental.pallas import tpu as pltpu


def _gat_fused_kernel(h_ref, w_ref, attn_ref, bias_ref, adj_ref, out_ref, *,
                      heads, out_f, n_dst, neg_slope, reduce_mean, apply_elu):
    # ---- fused projection over all heads (single MXU matmul, lane-dense N) ----
    feat = jnp.dot(h_ref[...], w_ref[...],
                   preferred_element_type=jnp.float32)          # [n_src, H*out_f] f32
    feat_bf = feat.astype(jnp.bfloat16)

    # ---- attention scores for all heads in one matmul ----
    # attn_ref is block-diagonal stacked: col h -> a_l of head h, col heads+h -> a_r.
    scores = jnp.dot(feat_bf, attn_ref[...],
                     preferred_element_type=jnp.float32)        # [n_src, 2H] f32
    el_all = scores[:, :heads]                                  # [n_src, H] src ("left") scores
    er_all = scores[:n_dst, heads:]                             # [n_dst, H] dst scores (dst = prefix of src)
    el_rows = el_all.T                                          # [H, n_src] one small transpose for all heads

    # ---- shared additive edge mask (computed once, reused by every head) ----
    adj = adj_ref[...].astype(jnp.float32)                      # int8 -> f32
    mask_neg = jnp.where(adj > 0.0, 0.0, -1e30)                 # [n_dst, n_src]

    head_outs = []
    for hd in range(heads):
        e = er_all[:, hd:hd + 1] + el_rows[hd:hd + 1, :]        # [n_dst, n_src]
        e = jnp.where(e > 0, e, neg_slope * e)                  # LeakyReLU(0.2)
        e = e + mask_neg                                        # mask missing edges
        m = jnp.max(e, axis=-1, keepdims=True)
        p = jnp.exp(e - m)                                      # masked entries underflow to 0
        denom = jnp.maximum(jnp.sum(p, axis=-1, keepdims=True), 1e-30)
        alpha = p * pl.reciprocal(denom, approx=True)           # edge softmax (EUP reciprocal)
        agg = jnp.dot(alpha.astype(jnp.bfloat16),
                      feat_bf[:, hd * out_f:(hd + 1) * out_f],
                      preferred_element_type=jnp.float32)       # [n_dst, out_f]
        head_outs.append(agg)

    if reduce_mean:
        out = head_outs[0]
        for hd in range(1, heads):
            out = out + head_outs[hd]
        out = out * (1.0 / heads) + bias_ref[...]               # bias already head-averaged
    else:
        # Lane-dense flattened output [n_dst, H*out_f] written in one unmasked store.
        out = jnp.concatenate(head_outs, axis=-1) + bias_ref[...]
    if apply_elu:
        out = jnp.where(out > 0, out, jnp.exp(out) - 1.0)       # ELU
    out_ref[...] = out


def gat_conv(h_src, adj_i8, W, attn_l, attn_r, bias, *, n_dst, apply_elu, reduce_mean):
    """One GATConv layer.

    Returns [n_dst, heads*out_f] (flattened heads) or [n_dst, out_f] (head mean), f32.
    """
    heads, in_dim, out_f = W.shape
    n_src = h_src.shape[0]

    # Fuse heads into the lane axis: one [in_dim, heads*out_f] projection matrix (bf16).
    w_all = jnp.transpose(W, (1, 0, 2)).reshape(in_dim, heads * out_f).astype(jnp.bfloat16)

    # Block-diagonal stacked attention vectors so that  scores = feat_all @ attn_stack
    # gives el (cols [:H]) and er (cols [H:]) for every head at once.
    eye = jnp.eye(heads, dtype=jnp.float32)
    a_l = (attn_l[:, 0, :, None] * eye[:, None, :]).reshape(heads * out_f, heads)
    a_r = (attn_r[:, 0, :, None] * eye[:, None, :]).reshape(heads * out_f, heads)
    attn_stack = jnp.concatenate([a_l, a_r], axis=-1).astype(jnp.bfloat16)    # [H*out_f, 2H]

    if reduce_mean:
        bias_arr = jnp.mean(bias[:, 0, :], axis=0, keepdims=True)             # [1, out_f]
        out_cols = out_f
    else:
        bias_arr = bias[:, 0, :].reshape(1, heads * out_f)                    # [1, H*out_f]
        out_cols = heads * out_f

    kernel = functools.partial(
        _gat_fused_kernel, heads=heads, out_f=out_f, n_dst=n_dst,
        neg_slope=0.2, reduce_mean=reduce_mean, apply_elu=apply_elu)

    flops = (2 * n_src * in_dim * heads * out_f            # projection
             + 2 * n_src * heads * out_f * 2 * heads       # attention scores
             + 2 * heads * n_dst * n_src * out_f           # alpha @ feat
             + 10 * heads * n_dst * n_src)                 # softmax / mask elementwise
    transcendentals = heads * n_dst * n_src + (n_dst * out_cols if apply_elu else 0)
    bytes_accessed = (n_src * in_dim * 2 + w_all.size * 2 + attn_stack.size * 2
                      + bias_arr.size * 4 + adj_i8.size + n_dst * out_cols * 4)

    # TODO(synk): for production sampled-graph sizes, tile dst/src with an online-softmax
    # grid (flash-attention style) and gather degree-bounded neighbor lists via scalar
    # prefetch instead of the dense [n_dst, n_src] mask (mandatory on v7x's 64 MiB VMEM).
    return pl.pallas_call(
        kernel,
        out_shape=jax.ShapeDtypeStruct((n_dst, out_cols), jnp.float32),
        in_specs=[pl.BlockSpec(memory_space=pltpu.MemorySpace.VMEM)] * 5,
        out_specs=pl.BlockSpec(memory_space=pltpu.MemorySpace.VMEM),
        cost_estimate=pl.CostEstimate(flops=flops,
                                      transcendentals=transcendentals,
                                      bytes_accessed=bytes_accessed),
    )(h_src.astype(jnp.bfloat16), w_all, attn_stack,
      bias_arr.astype(jnp.float32), adj_i8)


def init_gat_params(key, in_dim, out_dim, heads):
    k1, k2, k3 = jax.random.split(key, 3)
    scale_w = (2.0 / (in_dim + out_dim)) ** 0.5
    W = scale_w * jax.random.normal(k1, (heads, in_dim, out_dim), jnp.float32)
    attn_l = 0.1 * jax.random.normal(k2, (heads, 1, out_dim), jnp.float32)
    attn_r = 0.1 * jax.random.normal(k3, (heads, 1, out_dim), jnp.float32)
    bias = jnp.zeros((heads, 1, out_dim), jnp.float32)
    return W, attn_l, attn_r, bias


def npc_gat_forward(blocks, input_feats, params, n_layers):
    """Mirrors NPCGAT.forward. feat_drop/attn_drop/dropout are identity (inference)."""
    h = input_feats
    for l in range(n_layers):
        adj, n_dst = blocks[l]
        W, al, ar, b = params[l]
        last = (l == n_layers - 1)
        # Intermediate layers: ELU + flatten(heads) fused in-kernel.
        # Final layer: head-mean fused in-kernel, no activation.
        h = gat_conv(h, adj, W, al, ar, b, n_dst=n_dst,
                     apply_elu=not last, reduce_mean=last)
        # TODO(synk): NPFeatureShuffle after layer 0 is a distributed all-to-all across
        # ranks; on a single device fsi.inverse_idx is the identity permutation, so it
        # is a no-op and intentionally omitted here.
    return h


if __name__ == "__main__":
    key = jax.random.PRNGKey(0)

    # Module config (args): fan_out=[10, 5] -> n_layers=2, input_dim=16, num_hidden=32,
    # num_classes=8, heads=[4, 4], dropout=0.0 (inference mode).
    in_feats, n_hidden, n_classes = 16, 32, 8
    heads = [4, 4]
    n_layers = 2
    n2, n1, n0_src = 4, 16, 32     # final dst nodes, layer-0 dst / layer-1 src, layer-0 src

    kf, ka0, ka1, kp0, kp1 = jax.random.split(key, 5)
    input_feats = jax.random.normal(kf, (n0_src, in_feats), jnp.float32)

    # Synthetic DGL-style blocks as dense int8 adjacency masks (dst i == src i -> self edge,
    # which guarantees every softmax row has at least one valid edge).
    adj0 = jnp.logical_or(jax.random.uniform(ka0, (n1, n0_src)) < 0.3,
                          jnp.eye(n1, n0_src, dtype=jnp.float32) > 0).astype(jnp.int8)
    adj1 = jnp.logical_or(jax.random.uniform(ka1, (n2, n1)) < 0.5,
                          jnp.eye(n2, n1, dtype=jnp.float32) > 0).astype(jnp.int8)
    blocks = [(adj0, n1), (adj1, n2)]

    params = [
        init_gat_params(kp0, in_feats, n_hidden, heads[0]),
        init_gat_params(kp1, n_hidden * heads[0], n_classes, heads[1]),
    ]

    out = npc_gat_forward(blocks, input_feats, params, n_layers)
    out = jax.block_until_ready(out)
    assert out.shape == (n2, n_classes), out.shape
    assert bool(jnp.all(jnp.isfinite(out)))
    print("KERNEL_OK")
</pallas_src>

<mosaic_0001>
module attributes {stable_mosaic.version = 11 : i64} {
  func.func @_gat_fused_kernel(%arg0: memref<32x16xbf16, #tpu.memory_space<vmem>>, %arg1: memref<16x128xbf16, #tpu.memory_space<vmem>>, %arg2: memref<128x8xbf16, #tpu.memory_space<vmem>>, %arg3: memref<1x128xf32, #tpu.memory_space<vmem>>, %arg4: memref<16x32xi8, #tpu.memory_space<vmem>>, %arg5: memref<16x128xf32, #tpu.memory_space<vmem>>) attributes {dimension_semantics = [], scalar_prefetch = 0 : i64, scratch_operands = 0 : i64, tpu.core_type = #tpu.core_type<tc>} {
    %c0 = arith.constant 0 : index
    %c0_0 = arith.constant 0 : index
    %0 = vector.load %arg0[%c0, %c0_0] : memref<32x16xbf16, #tpu.memory_space<vmem>>, vector<32x16xbf16>
    %c0_1 = arith.constant 0 : index
    %c0_2 = arith.constant 0 : index
    %1 = vector.load %arg1[%c0_1, %c0_2] : memref<16x128xbf16, #tpu.memory_space<vmem>>, vector<16x128xbf16>
    %cst = arith.constant dense<0.000000e+00> : vector<32x128xf32>
    %2 = tpu.matmul %0, %1, %cst {dimension_numbers = #tpu.dot_dimension_numbers<[1], [0], [0], [1], [0, 0, 1, 1], [], []>} : vector<32x16xbf16>, vector<16x128xbf16>, vector<32x128xf32> -> vector<32x128xf32>
    %3 = arith.truncf %2 : vector<32x128xf32> to vector<32x128xbf16>
    %c0_3 = arith.constant 0 : index
    %c0_4 = arith.constant 0 : index
    %4 = vector.load %arg2[%c0_3, %c0_4] : memref<128x8xbf16, #tpu.memory_space<vmem>>, vector<128x8xbf16>
    %cst_5 = arith.constant dense<0.000000e+00> : vector<32x8xf32>
    %5 = tpu.matmul %3, %4, %cst_5 {dimension_numbers = #tpu.dot_dimension_numbers<[1], [0], [0], [1], [0, 0, 1, 1], [], []>} : vector<32x128xbf16>, vector<128x8xbf16>, vector<32x8xf32> -> vector<32x8xf32>
    %6 = vector.extract_strided_slice %5 {offsets = [0, 0], sizes = [32, 4], strides = [1, 1]} : vector<32x8xf32> to vector<32x4xf32>
    %7 = vector.extract_strided_slice %5 {offsets = [0, 4], sizes = [16, 4], strides = [1, 1]} : vector<32x8xf32> to vector<16x4xf32>
    %8 = tpu.transpose %6, [1, 0] : vector<32x4xf32> -> vector<4x32xf32>
    %c0_6 = arith.constant 0 : index
    %c0_7 = arith.constant 0 : index
    %9 = vector.load %arg4[%c0_6, %c0_7] : memref<16x32xi8, #tpu.memory_space<vmem>>, vector<16x32xi8>
    %10 = arith.sitofp %9 : vector<16x32xi8> to vector<16x32xf32>
    %cst_8 = arith.constant 0.000000e+00 : f32
    %11 = vector.broadcast %cst_8 : f32 to vector<16x32xf32>
    %12 = arith.cmpf ogt, %10, %11 : vector<16x32xf32>
    %cst_9 = arith.constant 0.000000e+00 : f32
    %cst_10 = arith.constant -1.000000e+30 : f32
    %13 = vector.broadcast %cst_9 : f32 to vector<16x32xf32>
    %14 = vector.broadcast %cst_10 : f32 to vector<16x32xf32>
    %15 = arith.select %12, %13, %14 : vector<16x32xi1>, vector<16x32xf32>
    %16 = vector.extract_strided_slice %7 {offsets = [0, 0], sizes = [16, 1], strides = [1, 1]} : vector<16x4xf32> to vector<16x1xf32>
    %17 = vector.extract_strided_slice %8 {offsets = [0, 0], sizes = [1, 32], strides = [1, 1]} : vector<4x32xf32> to vector<1x32xf32>
    %18 = vector.broadcast %16 : vector<16x1xf32> to vector<16x32xf32>
    %19 = vector.broadcast %17 : vector<1x32xf32> to vector<16x32xf32>
    %20 = arith.addf %18, %19 : vector<16x32xf32>
    %cst_11 = arith.constant 0.000000e+00 : f32
    %21 = vector.broadcast %cst_11 : f32 to vector<16x32xf32>
    %22 = arith.cmpf ogt, %20, %21 : vector<16x32xf32>
    %cst_12 = arith.constant 2.000000e-01 : f32
    %23 = vector.broadcast %cst_12 : f32 to vector<16x32xf32>
    %24 = arith.mulf %23, %20 : vector<16x32xf32>
    %25 = arith.select %22, %20, %24 : vector<16x32xi1>, vector<16x32xf32>
    %26 = arith.addf %25, %15 : vector<16x32xf32>
    %cst_13 = arith.constant dense<0xFF800000> : vector<16xf32>
    %27 = vector.multi_reduction <maximumf>, %26, %cst_13 [1] : vector<16x32xf32> to vector<16xf32>
    %28 = vector.shape_cast %27 : vector<16xf32> to vector<16x1xf32>
    %29 = vector.broadcast %28 : vector<16x1xf32> to vector<16x32xf32>
    %30 = arith.subf %26, %29 : vector<16x32xf32>
    %31 = math.exp %30 : vector<16x32xf32>
    %cst_14 = arith.constant dense<0.000000e+00> : vector<16xf32>
    %32 = vector.multi_reduction <add>, %31, %cst_14 [1] : vector<16x32xf32> to vector<16xf32>
    %33 = vector.shape_cast %32 : vector<16xf32> to vector<16x1xf32>
    %cst_15 = arith.constant 1.000000e-30 : f32
    %34 = vector.broadcast %cst_15 : f32 to vector<16x1xf32>
    %35 = arith.maximumf %33, %34 : vector<16x1xf32>
    %36 = tpu.reciprocal %35 {approx = true} : vector<16x1xf32> -> vector<16x1xf32>
    %37 = vector.broadcast %36 : vector<16x1xf32> to vector<16x32xf32>
    %38 = arith.mulf %31, %37 : vector<16x32xf32>
    %39 = arith.truncf %38 : vector<16x32xf32> to vector<16x32xbf16>
    %40 = vector.extract_strided_slice %3 {offsets = [0, 0], sizes = [32, 32], strides = [1, 1]} : vector<32x128xbf16> to vector<32x32xbf16>
    %cst_16 = arith.constant dense<0.000000e+00> : vector<16x32xf32>
    %41 = tpu.matmul %39, %40, %cst_16 {dimension_numbers = #tpu.dot_dimension_numbers<[1], [0], [0], [1], [0, 0, 1, 1], [], []>} : vector<16x32xbf16>, vector<32x32xbf16>, vector<16x32xf32> -> vector<16x32xf32>
    %42 = vector.extract_strided_slice %7 {offsets = [0, 1], sizes = [16, 1], strides = [1, 1]} : vector<16x4xf32> to vector<16x1xf32>
    %43 = vector.extract_strided_slice %8 {offsets = [1, 0], sizes = [1, 32], strides = [1, 1]} : vector<4x32xf32> to vector<1x32xf32>
    %44 = vector.broadcast %42 : vector<16x1xf32> to vector<16x32xf32>
    %45 = vector.broadcast %43 : vector<1x32xf32> to vector<16x32xf32>
    %46 = arith.addf %44, %45 : vector<16x32xf32>
    %cst_17 = arith.constant 0.000000e+00 : f32
    %47 = vector.broadcast %cst_17 : f32 to vector<16x32xf32>
    %48 = arith.cmpf ogt, %46, %47 : vector<16x32xf32>
    %cst_18 = arith.constant 2.000000e-01 : f32
    %49 = vector.broadcast %cst_18 : f32 to vector<16x32xf32>
    %50 = arith.mulf %49, %46 : vector<16x32xf32>
    %51 = arith.select %48, %46, %50 : vector<16x32xi1>, vector<16x32xf32>
    %52 = arith.addf %51, %15 : vector<16x32xf32>
    %cst_19 = arith.constant dense<0xFF800000> : vector<16xf32>
    %53 = vector.multi_reduction <maximumf>, %52, %cst_19 [1] : vector<16x32xf32> to vector<16xf32>
    %54 = vector.shape_cast %53 : vector<16xf32> to vector<16x1xf32>
    %55 = vector.broadcast %54 : vector<16x1xf32> to vector<16x32xf32>
    %56 = arith.subf %52, %55 : vector<16x32xf32>
    %57 = math.exp %56 : vector<16x32xf32>
    %cst_20 = arith.constant dense<0.000000e+00> : vector<16xf32>
    %58 = vector.multi_reduction <add>, %57, %cst_20 [1] : vector<16x32xf32> to vector<16xf32>
    %59 = vector.shape_cast %58 : vector<16xf32> to vector<16x1xf32>
    %cst_21 = arith.constant 1.000000e-30 : f32
    %60 = vector.broadcast %cst_21 : f32 to vector<16x1xf32>
    %61 = arith.maximumf %59, %60 : vector<16x1xf32>
    %62 = tpu.reciprocal %61 {approx = true} : vector<16x1xf32> -> vector<16x1xf32>
    %63 = vector.broadcast %62 : vector<16x1xf32> to vector<16x32xf32>
    %64 = arith.mulf %57, %63 : vector<16x32xf32>
    %65 = arith.truncf %64 : vector<16x32xf32> to vector<16x32xbf16>
    %66 = vector.extract_strided_slice %3 {offsets = [0, 32], sizes = [32, 32], strides = [1, 1]} : vector<32x128xbf16> to vector<32x32xbf16>
    %cst_22 = arith.constant dense<0.000000e+00> : vector<16x32xf32>
    %67 = tpu.matmul %65, %66, %cst_22 {dimension_numbers = #tpu.dot_dimension_numbers<[1], [0], [0], [1], [0, 0, 1, 1], [], []>} : vector<16x32xbf16>, vector<32x32xbf16>, vector<16x32xf32> -> vector<16x32xf32>
    %68 = vector.extract_strided_slice %7 {offsets = [0, 2], sizes = [16, 1], strides = [1, 1]} : vector<16x4xf32> to vector<16x1xf32>
    %69 = vector.extract_strided_slice %8 {offsets = [2, 0], sizes = [1, 32], strides = [1, 1]} : vector<4x32xf32> to vector<1x32xf32>
    %70 = vector.broadcast %68 : vector<16x1xf32> to vector<16x32xf32>
    %71 = vector.broadcast %69 : vector<1x32xf32> to vector<16x32xf32>
    %72 = arith.addf %70, %71 : vector<16x32xf32>
    %cst_23 = arith.constant 0.000000e+00 : f32
    %73 = vector.broadcast %cst_23 : f32 to vector<16x32xf32>
    %74 = arith.cmpf ogt, %72, %73 : vector<16x32xf32>
    %cst_24 = arith.constant 2.000000e-01 : f32
    %75 = vector.broadcast %cst_24 : f32 to vector<16x32xf32>
    %76 = arith.mulf %75, %72 : vector<16x32xf32>
    %77 = arith.select %74, %72, %76 : vector<16x32xi1>, vector<16x32xf32>
    %78 = arith.addf %77, %15 : vector<16x32xf32>
    %cst_25 = arith.constant dense<0xFF800000> : vector<16xf32>
    %79 = vector.multi_reduction <maximumf>, %78, %cst_25 [1] : vector<16x32xf32> to vector<16xf32>
    %80 = vector.shape_cast %79 : vector<16xf32> to vector<16x1xf32>
    %81 = vector.broadcast %80 : vector<16x1xf32> to vector<16x32xf32>
    %82 = arith.subf %78, %81 : vector<16x32xf32>
    %83 = math.exp %82 : vector<16x32xf32>
    %cst_26 = arith.constant dense<0.000000e+00> : vector<16xf32>
    %84 = vector.multi_reduction <add>, %83, %cst_26 [1] : vector<16x32xf32> to vector<16xf32>
    %85 = vector.shape_cast %84 : vector<16xf32> to vector<16x1xf32>
    %cst_27 = arith.constant 1.000000e-30 : f32
    %86 = vector.broadcast %cst_27 : f32 to vector<16x1xf32>
    %87 = arith.maximumf %85, %86 : vector<16x1xf32>
    %88 = tpu.reciprocal %87 {approx = true} : vector<16x1xf32> -> vector<16x1xf32>
    %89 = vector.broadcast %88 : vector<16x1xf32> to vector<16x32xf32>
    %90 = arith.mulf %83, %89 : vector<16x32xf32>
    %91 = arith.truncf %90 : vector<16x32xf32> to vector<16x32xbf16>
    %92 = vector.extract_strided_slice %3 {offsets = [0, 64], sizes = [32, 32], strides = [1, 1]} : vector<32x128xbf16> to vector<32x32xbf16>
    %cst_28 = arith.constant dense<0.000000e+00> : vector<16x32xf32>
    %93 = tpu.matmul %91, %92, %cst_28 {dimension_numbers = #tpu.dot_dimension_numbers<[1], [0], [0], [1], [0, 0, 1, 1], [], []>} : vector<16x32xbf16>, vector<32x32xbf16>, vector<16x32xf32> -> vector<16x32xf32>
    %94 = vector.extract_strided_slice %7 {offsets = [0, 3], sizes = [16, 1], strides = [1, 1]} : vector<16x4xf32> to vector<16x1xf32>
    %95 = vector.extract_strided_slice %8 {offsets = [3, 0], sizes = [1, 32], strides = [1, 1]} : vector<4x32xf32> to vector<1x32xf32>
    %96 = vector.broadcast %94 : vector<16x1xf32> to vector<16x32xf32>
    %97 = vector.broadcast %95 : vector<1x32xf32> to vector<16x32xf32>
    %98 = arith.addf %96, %97 : vector<16x32xf32>
    %cst_29 = arith.constant 0.000000e+00 : f32
    %99 = vector.broadcast %cst_29 : f32 to vector<16x32xf32>
    %100 = arith.cmpf ogt, %98, %99 : vector<16x32xf32>
    %cst_30 = arith.constant 2.000000e-01 : f32
    %101 = vector.broadcast %cst_30 : f32 to vector<16x32xf32>
    %102 = arith.mulf %101, %98 : vector<16x32xf32>
    %103 = arith.select %100, %98, %102 : vector<16x32xi1>, vector<16x32xf32>
    %104 = arith.addf %103, %15 : vector<16x32xf32>
    %cst_31 = arith.constant dense<0xFF800000> : vector<16xf32>
    %105 = vector.multi_reduction <maximumf>, %104, %cst_31 [1] : vector<16x32xf32> to vector<16xf32>
    %106 = vector.shape_cast %105 : vector<16xf32> to vector<16x1xf32>
    %107 = vector.broadcast %106 : vector<16x1xf32> to vector<16x32xf32>
    %108 = arith.subf %104, %107 : vector<16x32xf32>
    %109 = math.exp %108 : vector<16x32xf32>
    %cst_32 = arith.constant dense<0.000000e+00> : vector<16xf32>
    %110 = vector.multi_reduction <add>, %109, %cst_32 [1] : vector<16x32xf32> to vector<16xf32>
    %111 = vector.shape_cast %110 : vector<16xf32> to vector<16x1xf32>
    %cst_33 = arith.constant 1.000000e-30 : f32
    %112 = vector.broadcast %cst_33 : f32 to vector<16x1xf32>
    %113 = arith.maximumf %111, %112 : vector<16x1xf32>
    %114 = tpu.reciprocal %113 {approx = true} : vector<16x1xf32> -> vector<16x1xf32>
    %115 = vector.broadcast %114 : vector<16x1xf32> to vector<16x32xf32>
    %116 = arith.mulf %109, %115 : vector<16x32xf32>
    %117 = arith.truncf %116 : vector<16x32xf32> to vector<16x32xbf16>
    %118 = vector.extract_strided_slice %3 {offsets = [0, 96], sizes = [32, 32], strides = [1, 1]} : vector<32x128xbf16> to vector<32x32xbf16>
    %cst_34 = arith.constant dense<0.000000e+00> : vector<16x32xf32>
    %119 = tpu.matmul %117, %118, %cst_34 {dimension_numbers = #tpu.dot_dimension_numbers<[1], [0], [0], [1], [0, 0, 1, 1], [], []>} : vector<16x32xbf16>, vector<32x32xbf16>, vector<16x32xf32> -> vector<16x32xf32>
    %120 = tpu.concatenate %41, %67, %93, %119 in 1 : vector<16x32xf32>, vector<16x32xf32>, vector<16x32xf32>, vector<16x32xf32> -> vector<16x128xf32>
    %c0_35 = arith.constant 0 : index
    %c0_36 = arith.constant 0 : index
    %121 = vector.load %arg3[%c0_35, %c0_36] : memref<1x128xf32, #tpu.memory_space<vmem>>, vector<1x128xf32>
    %122 = vector.broadcast %121 : vector<1x128xf32> to vector<16x128xf32>
    %123 = arith.addf %120, %122 : vector<16x128xf32>
    %cst_37 = arith.constant 0.000000e+00 : f32
    %124 = vector.broadcast %cst_37 : f32 to vector<16x128xf32>
    %125 = arith.cmpf ogt, %123, %124 : vector<16x128xf32>
    %126 = math.exp %123 : vector<16x128xf32>
    %cst_38 = arith.constant 1.000000e+00 : f32
    %127 = vector.broadcast %cst_38 : f32 to vector<16x128xf32>
    %128 = arith.subf %126, %127 : vector<16x128xf32>
    %129 = arith.select %125, %123, %128 : vector<16x128xi1>, vector<16x128xf32>
    %c0_39 = arith.constant 0 : index
    %c0_40 = arith.constant 0 : index
    %130 = vector.load %arg5[%c0_39, %c0_40] : memref<16x128xf32, #tpu.memory_space<vmem>>, vector<16x128xf32>
    tpu.vector_store %arg5[%c0_39, %c0_40], %129 {strides = array<i32>} : memref<16x128xf32, #tpu.memory_space<vmem>>, vector<16x128xf32>,
    return
  }
}

</mosaic_0001>

<bundles_post_ra>
// kernel: tpu_custom_call.1
= control target key start
LH: loop header
LB: loop body
LE: loop exit
PB: predicated region body
PF: predicated region fallthrough
CT: control target
= control target key end

     0   :  { %vm44_vm0 = vcmask 130048   ;;  %s1097_s0 = inlined_call_operand.vmem [shape: bf16[32,16], index: 0, kind: input, shape index: {}]   ;;  %s1098_s1 = inlined_call_operand.vmem [shape: bf16[16,128], index: 1, kind: input, shape index: {}]   ;;  %s1099_s2 = inlined_call_operand.vmem [shape: bf16[128,8], index: 2, kind: input, shape index: {}]   ;;  %s1100_s3 = inlined_call_operand.vmem [shape: f32[1,128], index: 3, kind: input, shape index: {}]   ;;  %s1101_s4 = inlined_call_operand.vmem [shape: s8[16,32], index: 4, kind: input, shape index: {}]   ;;  %s1102_s5 = inlined_call_operand.hbm [shape: f32[16,128], index: 5, kind: output, shape index: {}]  }
   0x1   :  { %v840_v0 = vld [vmem:[%s1098_s1] sm:$0xff]   ;;  %v842_v2 = vld [vmem:[%s1097_s0 + $0x8] sm:$0xff]   ;;  %v845_v5 = vld [vmem:[%s1099_s2 + $0x10] sm:$0xff]  }
   0x2   :  { %v841_v1 = vld [vmem:[%s1097_s0] sm:$0xff]   ;;  %762 = vmatprep.subr.bf16.mxu0 %v840_v0  ;;  %v844_v4 = vld [vmem:[%s1099_s2 + $0x8] sm:$0xff]  }
   0x3   :  { %763 = vmatpush3.bf16.msra.mxu0 %v840_v0  ;;  %764 = vmatprep.mubr.msk.bf16.mxu0 %vm44_vm0, %v841_v1  ;;  %v843_v3 = vld [vmem:[%s1099_s2] sm:$0xff]  }
   0x4   :  { %768 = vmatprep.subr.bf16.mxu1 %v843_v3 }
   0x5   :  { %769 = vmatpush3.bf16.msra.mxu1 %v843_v3 }
   0x6   :  { %765 = vmatmul.mubr.msk.bf16.vlgmr.msra.gmra.mrb[0].mxu0 %vm44_vm0, %v842_v2  ;;  %770 = vmatprep.subr.bf16.mxu1 %v844_v4 }
   0x9   :  { %771 = vmatpush3.bf16.msra.mxu1 %v844_v4 }
   0xa   :  { %10 = vsyncpa [#allocation3], 0  ;;  %772 = vmatprep.subr.bf16.mxu1 %v845_v5  ;;  %v846_v6 = vld [vmem:[%s1099_s2 + $0x18] sm:$0xff]   ;;  %v847_v7 = vld [vmem:[%s1099_s2 + $0x20] sm:$0xff]   ;;  %v911_v11 = vmov 0.0   ;;  %v912_v18 = vmov 5   ;;  %v267_v28 = vlaneseq }
   0xb   :  { %v848_v8 = vld [vmem:[%s1099_s2 + $0x28] sm:$0xff]   ;;  %v849_v9 = vld [vmem:[%s1099_s2 + $0x30] sm:$0xff]   ;;  %v850_v10 = vld [vmem:[%s1099_s2 + $0x38] sm:$0xff]   ;;  %788 = vmatprep.subr.bf16.mxu0 %v911_v11  ;;  %834 = vset.pattern.permute.xlu1 %v912_v18  ;;  %v913_v19 = vmov 4   ;;  %v914_v24 = vmov 7   ;;  %v915_v25 = vmov 6  }
   0xc   :  { %833 = vset.pattern.permute.xlu0 %v913_v19  ;;  %v734_v30 = vld [vmem:[%s1101_s4] sm:$0xf]   ;;  %v268_v31 = vshrl.u32 %v267_v28, 7  ;;  %v916_v51 = vmov -1e+30   ;;  %vm281_vm5 = vcmask 261120  }
   0xd   :  { %773 = vmatpush3.bf16.msra.mxu1 %v845_v5  ;;  %v735_v32 = vunpack.c.0.s8 %v734_v30  ;;  %v736_v33 = vunpack.c.1.s8 %v734_v30  ;;  %s917_s4 = smov 96   ;;  %s918_s14 = smov 64   ;;  %vm920_vm12 = vmmov 0   ;;  %vm670_vm13 = vcmask 523264  }
   0xe   :  { %774 = vmatprep.subr.bf16.mxu1 %v846_v6  ;;  %v269_v36 = vsub.s32 0, %v268_v31  ;;  %v361_v37 = vsub.s32 1, %v268_v31  ;;  %v460_v38 = vsub.s32 2, %v268_v31  ;;  %v557_v49 = vsub.s32 3, %v268_v31  ;;  %s919_s15 = smov 32   ;;  %792 = vmatprep.mubr.msk.bf16.mxu0 %vm920_vm12, %v911_v11  ;;  %s921_s18 = smov [#allocation2]  }
   0xf   :  { %v251_v39 = vcvt.s32.f32 %v735_v32  ;;  %v252_v40 = vcvt.s32.f32 %v736_v33  ;;  %vm673_vm14 = vcmask 785408   ;;  %s702_s19 = sshll.u32 %s921_s18, 4  ;;  %s703_s19 = int_to_ptr.vmem [resolvable:$true] %s702_s19 }
  0x10   :  { %p892_p1 = scmp.lt.s32.totalorder %s703_s19, %s703_s19 }
  0x11   :  { %775 = vmatpush3.bf16.msra.mxu1 %v846_v6  ;;  %vm253_vm1 = vcmp.gt.f32.partialorder %v251_v39, 0.0  ;;  %vm254_vm2 = vcmp.gt.f32.partialorder %v252_v40, 0.0 }
  0x12   :  { %776 = vmatprep.subr.bf16.mxu1 %v847_v7  ;;  %v255_v52 = vsel %vm253_vm1, 0.0, %v916_v51  ;;  %v256_v55 = vsel %vm254_vm2, 0.0, %v916_v51 }
  0x15   :  { %777 = vmatpush3.bf16.msra.mxu1 %v847_v7 }
  0x16   :  { %778 = vmatprep.subr.bf16.mxu1 %v848_v8 }
  0x19   :  { %779 = vmatpush3.bf16.msra.mxu1 %v848_v8 }
  0x1a   :  { %780 = vmatprep.subr.bf16.mxu1 %v849_v9 }
  0x1d   :  { %781 = vmatpush3.bf16.msra.mxu1 %v849_v9 }
  0x1e   :  { %782 = vmatprep.subr.bf16.mxu1 %v850_v10 }
  0x21   :  { %783 = vmatpush3.bf16.msra.mxu1 %v850_v10 }
  0xd9   :  { %v766_v12 = vpop.f32.mrb[0].mxu0 }
  0xda   :  { %v85_v13 = vpop.f32.mrb[1].mxu0 }
  0xdb   :  { %v767_v14 = vpop.f32.mrb[2].mxu0 }
  0xdc   :  { %v988_v15 = vpack.c.bf16 %v767_v14, %v766_v12  ;;  %v88_v16 = vpop.f32.mrb[3].mxu0 }
  0xdd   :  { %v990_v17 = vpack.c.bf16 %v88_v16, %v85_v13 }
  0xdf   :  { %784 = vmatprep.mubr.bf16.mxu1 %v990_v17  ;;  %789 = vmatpush3.bf16.msra.mxu0 %v990_v17 }
  0xe0   :  { %785 = vmatmul.mubr.bf16.vlgmr.msra.gmra.mrb[0].mxu1 %v988_v15  ;;  %790 = vmatprep.subr.bf16.mxu0 %v911_v11 }
  0xe3   :  { %791 = vmatpush3.bf16.msra.mxu0 %v988_v15 }
  0xe4   :  { %796 = vmatprep.subr.bf16.mxu0 %v911_v11 }
 0x1b3   :  { %v786_v20 = vpop.f32.mrb[0].mxu1 }
 0x1b4   :  { %v200_v21 = vpop.f32.mrb[1].mxu1 }
 0x1b5   :  { %352 = vperm.xlu1 %834, %v200_v21   ;;  %259 = vperm.xlu0 %833, %v200_v21   ;;  %v787_v22 = vpop.f32.mrb[2].mxu1 }
 0x1b6   :  { %v203_v23 = vpop.f32.mrb[3].mxu1 }
 0x1b9   :  { %836 = vset.pattern.permute.xlu1 %v914_v24  ;;  %264 = vperm.xlu0 %833, %v203_v23  }
 0x1ba   :  { %548 = vperm.xlu1 %836, %v200_v21  }
 0x1bd   :  { %835 = vset.pattern.permute.xlu0 %v915_v25 }
 0x1be   :  { %837 = vset.pattern.permute.xlu1 %v912_v18  ;;  %451 = vperm.xlu0 %835, %v200_v21  }
 0x1bf   :  { %356 = vperm.xlu1 %837, %v203_v23  }
 0x1c2   :  { %839 = vset.pattern.permute.xlu0 %v914_v24 }
 0x1c3   :  { %838 = vset.pattern.permute.xlu1 %v915_v25  ;;  %552 = vperm.xlu0 %839, %v203_v23  }
 0x1c4   :  { %455 = vperm.xlu1 %838, %v203_v23  }
 0x1ed   :  { %215 = vxpose.xlu1.b32.start [1/4] (short) (narrow) %v200_v21, 8 }
 0x1f1   :  { %216 = vxpose.xlu1.b32.cont [2/4] (short) (narrow) %v203_v23, 8 }
 0x1f5   :  { %217 = vxpose.xlu1.b32.cont [3/4] (short) (narrow) %v786_v20, 8 }
 0x1f9   :  { %218 = vxpose.xlu1.b32.end [4/4] (short) (narrow) %v787_v22, 8 }
 0x234   :  { %v353_v26 = vpop.permute.xlu1 %352  ;;  %v260_v34 = vpop.permute.xlu0 %259 }
 0x238   :  { %v265_v45 = vpop.permute.xlu0 %264 }
 0x239   :  { %v549_v27 = vpop.permute.xlu1 %548 }
 0x23d   :  { %v452_v0 = vpop.permute.xlu0 %451 }
 0x23e   :  { %v357_v29 = vpop.permute.xlu1 %356 }
 0x242   :  { %v553_v14 = vpop.permute.xlu0 %552 }
 0x243   :  { %v456_v35 = vpop.permute.xlu1 %455 }
 0x26d   :  { %v231_v41 = vpop.trf.xlu1 }
 0x26e   :  { %v270_v42 = vrot.slane %v231_v41, %v269_v36  ;;  %v362_v43 = vrot.slane %v231_v41, %v361_v37  ;;  %v461_v44 = vrot.slane %v231_v41, %v460_v38  ;;  %v558_v1 = vrot.slane %v231_v41, %v557_v49 }
 0x270   :  { %v271_v46 = vadd.f32 %v270_v42, %v260_v34  ;;  %v272_v47 = vadd.f32 %v270_v42, %v265_v45  ;;  %v363_v48 = vadd.f32 %v362_v43, %v353_v26  ;;  %v463_v50 = vadd.f32 %v461_v44, %v456_v35 }
 0x271   :  { %v364_v57 = vadd.f32 %v362_v43, %v357_v29  ;;  %v462_v4 = vadd.f32 %v461_v44, %v452_v0  ;;  %v559_v10 = vadd.f32 %v558_v1, %v549_v27  ;;  %v560_v19 = vadd.f32 %v558_v1, %v553_v14 }
 0x272   :  { %vm273_vm3 = vcmp.gt.f32.partialorder %v271_v46, 0.0  ;;  %v275_v53 = vmul.f32 0.2, %v271_v46  ;;  %vm274_vm4 = vcmp.gt.f32.partialorder %v272_v47, 0.0  ;;  %v276_v54 = vmul.f32 0.2, %v272_v47 }
 0x273   :  { %vm465_vm6 = vcmp.gt.f32.partialorder %v463_v50, 0.0  ;;  %v467_v56 = vmul.f32 0.2, %v463_v50  ;;  %v367_v60 = vmul.f32 0.2, %v363_v48  ;;  %vm365_vm7 = vcmp.gt.f32.partialorder %v363_v48, 0.0 }
 0x274   :  { %v277_v58 = vsel %vm273_vm3, %v271_v46, %v275_v53  ;;  %v278_v59 = vsel %vm274_vm4, %v272_v47, %v276_v54  ;;  %v368_v7 = vmul.f32 0.2, %v364_v57  ;;  %vm366_vm8 = vcmp.gt.f32.partialorder %v364_v57, 0.0 }
 0x275   :  { %v469_v61 = vsel %vm465_vm6, %v463_v50, %v467_v56  ;;  %v279_v62 = vadd.f32 %v277_v58, %v255_v52  ;;  %v1004_v3 = vadd.f32 %v278_v59, %v256_v55  ;;  %v369_v6 = vsel %vm365_vm7, %v363_v48, %v367_v60 }
 0x276   :  { %v1001_v63 = vadd.f32 %v469_v61, %v256_v55  ;;  %v371_v9 = vadd.f32 %v369_v6, %v255_v52  ;;  %v370_v12 = vsel %vm366_vm8, %v364_v57, %v368_v7  ;;  %v466_v13 = vmul.f32 0.2, %v462_v4 }
 0x277   :  { %v282_v2 = vsel %vm281_vm5, %v279_v62, -inf  ;;  %v285_v8 = vsel %vm281_vm5, %v1004_v3, -inf  ;;  %vm464_vm9 = vcmp.gt.f32.partialorder %v462_v4, 0.0  ;;  %v372_v18 = vadd.f32 %v370_v12, %v256_v55 }
 0x278   :  { %v475_v5 = vsel %vm281_vm5, %v1001_v63, -inf  ;;  %283 = vmax.xlane.f32.xlu0 %v282_v2  ;;  %v373_v16 = vsel %vm281_vm5, %v371_v9, -inf  ;;  %v468_v20 = vsel %vm464_vm9, %v462_v4, %v466_v13  ;;  %v563_v21 = vmul.f32 0.2, %v559_v10 }
 0x279   :  { %476 = vmax.xlane.f32.xlu1 %v475_v5  ;;  %vm561_vm10 = vcmp.gt.f32.partialorder %v559_v10, 0.0  ;;  %v376_v22 = vsel %vm281_vm5, %v372_v18, -inf  ;;  %v470_v23 = vadd.f32 %v468_v20, %v255_v52  ;;  %v564_v25 = vmul.f32 0.2, %v560_v19 }
 0x27a   :  { %v565_v24 = vsel %vm561_vm10, %v559_v10, %v563_v21  ;;  %vm562_vm11 = vcmp.gt.f32.partialorder %v560_v19, 0.0 }
 0x27b   :  { %v472_v26 = vsel %vm281_vm5, %v470_v23, -inf  ;;  %v567_v27 = vadd.f32 %v565_v24, %v255_v52  ;;  %v566_v28 = vsel %vm562_vm11, %v560_v19, %v564_v25 }
 0x27c   :  { %286 = vmax.xlane.f32.xlu0 %v285_v8  ;;  %v568_v30 = vadd.f32 %v566_v28, %v256_v55 }
 0x27d   :  { %v569_v29 = vsel %vm281_vm5, %v567_v27, -inf }
 0x27e   :  { %v572_v31 = vsel %vm281_vm5, %v568_v30, -inf }
 0x280   :  { %374 = vmax.xlane.f32.xlu0 %v373_v16 }
 0x284   :  { %377 = vmax.xlane.f32.xlu0 %v376_v22 }
 0x288   :  { %473 = vmax.xlane.f32.xlu0 %v472_v26 }
 0x28a   :  { %400 = vrot.lane.b32.xlu1 %v990_v17, %s917_s4 }
 0x28c   :  { %570 = vmax.xlane.f32.xlu0 %v569_v29 }
 0x28e   :  { %497 = vrot.lane.b32.xlu1 %v990_v17, %s918_s14 }
 0x290   :  { %573 = vmax.xlane.f32.xlu0 %v572_v31 }
 0x292   :  { %499 = vrot.lane.b32.xlu1 %v988_v15, %s918_s14 }
 0x296   :  { %596 = vrot.lane.b32.xlu1 %v988_v15, %s919_s15 }
 0x305   :  { %v284_v32 = vpop.xlane.xlu0 %283 }
 0x306   :  { %v288_v33 = vsub.f32 %v279_v62, %v284_v32  ;;  %v477_v62 = vpop.xlane.xlu1 %476 }
 0x307   :  { %v479_v0 = vsub.f32 %v1001_v63, %v477_v62 }
 0x308   :  { %v290_v34 = vmul.f32 1.442695, %v288_v33 }
 0x309   :  { %v287_v35 = vpop.xlane.xlu0 %286  ;;  %v482_v2 = vmul.f32 1.442695, %v479_v0 }
 0x30a   :  { %851 = vpow2.f32 %v290_v34  ;;  %v289_v44 = vsub.f32 %v1004_v3, %v287_v35  ;;  %v401_v25 = vpop.permute.xlu1 %400 }
 0x30c   :  { %v292_v49 = vmul.f32 1.442695, %v289_v44 }
 0x30d   :  { %v375_v36 = vpop.xlane.xlu0 %374 }
 0x30e   :  { %v379_v37 = vsub.f32 %v371_v9, %v375_v36 }
 0x310   :  { %v381_v38 = vmul.f32 1.442695, %v379_v37 }
 0x311   :  { %v378_v39 = vpop.xlane.xlu0 %377 }
 0x312   :  { %853 = vpow2.f32 %v381_v38  ;;  %v380_v50 = vsub.f32 %v372_v18, %v378_v39 }
 0x314   :  { %v1023_v40 = vpop.eup %851  ;;  %v383_v53 = vmul.f32 1.442695, %v380_v50 }
 0x315   :  { %v474_v41 = vpop.xlane.xlu0 %473  ;;  %v294_v42 = vsel %vm281_vm5, %v1023_v40, 0.0 }
 0x316   :  { %v478_v43 = vsub.f32 %v470_v23, %v474_v41  ;;  %295 = vadd.xlane.f32.xlu0 %v294_v42 }
 0x318   :  { %v480_v45 = vmul.f32 1.442695, %v478_v43 }
 0x319   :  { %v571_v46 = vpop.xlane.xlu0 %570 }
 0x31a   :  { %855 = vpow2.f32 %v480_v45  ;;  %v575_v47 = vsub.f32 %v567_v27, %v571_v46 }
 0x31c   :  { %v1028_v48 = vpop.eup %853  ;;  %v577_v51 = vmul.f32 1.442695, %v575_v47 }
 0x31d   :  { %v385_v52 = vsel %vm281_vm5, %v1028_v48, 0.0  ;;  %v574_v1 = vpop.xlane.xlu0 %573 }
 0x31e   :  { %857 = vpow2.f32 %v577_v51  ;;  %386 = vadd.xlane.f32.xlu0 %v385_v52  ;;  %v576_v3 = vsub.f32 %v568_v30, %v574_v1  ;;  %v498_v30 = vpop.permute.xlu1 %497 }
 0x31f   :  { %859 = vpow2.f32 %v292_v49 }
 0x320   :  { %861 = vpow2.f32 %v383_v53  ;;  %v579_v4 = vmul.f32 1.442695, %v576_v3 }
 0x321   :  { %863 = vpow2.f32 %v482_v2 }
 0x322   :  { %865 = vpow2.f32 %v579_v4  ;;  %v500_v32 = vpop.permute.xlu1 %499 }
 0x324   :  { %v1032_v54 = vpop.eup %855 }
 0x325   :  { %v484_v55 = vsel %vm281_vm5, %v1032_v54, 0.0 }
 0x326   :  { %485 = vadd.xlane.f32.xlu0 %v484_v55 }
 0x328   :  { %v1036_v56 = vpop.eup %857 }
 0x329   :  { %v581_v57 = vsel %vm281_vm5, %v1036_v56, 0.0  ;;  %v860_v58 = vpop.eup %859 }
 0x32a   :  { %582 = vadd.xlane.f32.xlu0 %v581_v57  ;;  %v297_v59 = vsel %vm281_vm5, %v860_v58, 0.0  ;;  %v862_v60 = vpop.eup %861 }
 0x32b   :  { %v388_v61 = vsel %vm281_vm5, %v862_v60, 0.0  ;;  %v864_v5 = vpop.eup %863 }
 0x32c   :  { %v487_v6 = vsel %vm281_vm5, %v864_v5, 0.0  ;;  %v1048_v7 = vpop.eup %865 }
 0x32e   :  { %298 = vadd.xlane.f32.xlu0 %v297_v59 }
 0x332   :  { %389 = vadd.xlane.f32.xlu0 %v388_v61 }
 0x348   :  { %402 = vrot.lane.b32.xlu0 %v988_v15, %s917_s4  ;;  %v584_v15 = vsel %vm281_vm5, %v1048_v7, 0.0 }
 0x367   :  { %488 = vadd.xlane.f32.xlu0 %v487_v6 }
 0x36b   :  { %585 = vadd.xlane.f32.xlu0 %v584_v15  ;;  %v730_v15 = vld [vmem:[%s1100_s3] ss:$0 sm:$0xff]  ;;  %s887_s3 = scalar_lea.vmem %s703_s19, 256 }
 0x36c   :  { %p888_p0 = scmp.ne.s32.totalorder %s703_s19, %s887_s3  ;;  %p893_p2 = scmp.lt.s32.totalorder %s887_s3, %s887_s3 }
 0x36e   :  { %p894_p3 = por %p893_p2, %p892_p1 }
 0x370   :  { %p895_p4 = pnand %p894_p3, %p888_p0 }
 0x381   :  { %594 = vrot.lane.b32.xlu0 %v990_v17, %s919_s15 }
 0x3a3   :  { %v296_v63 = vpop.xlane.xlu0 %295 }
 0x3a4   :  { %v300_v12 = vmax.f32 %v296_v63, 1e-30 }
 0x3a6   :  { %867 = vrcp.f32 %v300_v12 }
 0x3ab   :  { %v387_v8 = vpop.xlane.xlu0 %386 }
 0x3ac   :  { %v391_v18 = vmax.f32 %v387_v8, 1e-30 }
 0x3b0   :  { %v868_v20 = vpop.eup %867 }
 0x3b1   :  { %v304_v22 = vmul.f32 %v868_v20, %v1023_v40 }
 0x3b3   :  { %v486_v9 = vpop.xlane.xlu0 %485 }
 0x3b4   :  { %v490_v33 = vmax.f32 %v486_v9, 1e-30 }
 0x3b7   :  { %v583_v10 = vpop.xlane.xlu0 %582 }
 0x3b8   :  { %v587_v37 = vmax.f32 %v583_v10, 1e-30 }
 0x3bb   :  { %v299_v13 = vpop.xlane.xlu0 %298 }
 0x3bc   :  { %v301_v14 = vmax.f32 %v299_v13, 1e-30 }
 0x3be   :  { %869 = vrcp.f32 %v301_v14 }
 0x3bf   :  { %v390_v16 = vpop.xlane.xlu0 %389 }
 0x3c0   :  { %v392_v19 = vmax.f32 %v390_v16, 1e-30 }
 0x3c2   :  { %871 = vrcp.f32 %v392_v19 }
 0x3c3   :  { %873 = vrcp.f32 %v391_v18  ;;  %v403_v29 = vpop.permute.xlu0 %402 }
 0x3c4   :  { %875 = vrcp.f32 %v490_v33 }
 0x3c8   :  { %v870_v21 = vpop.eup %869 }
 0x3c9   :  { %v305_v23 = vmul.f32 %v870_v21, %v860_v58 }
 0x3cb   :  { %v306_v17 = vpack.c.bf16 %v305_v23, %v304_v22 }
 0x3cc   :  { %v872_v24 = vpop.eup %871 }
 0x3cd   :  { %793 = vmatmul.mubr.msk.bf16.vlgmr.msra.gmra.mrb[4].mxu0 %vm281_vm5, %v306_v17  ;;  %v874_v26 = vpop.eup %873  ;;  %v396_v27 = vmul.f32 %v872_v24, %v862_v60 }
 0x3ce   :  { %797 = vmatpush3.bf16.msra.mxu0 %v401_v25  ;;  %800 = vmatprep.mubr.msk.bf16.mxu0 %vm920_vm12, %v911_v11  ;;  %v395_v28 = vmul.f32 %v874_v26, %v1028_v48  ;;  %v876_v39 = vpop.eup %875  ;;  %v597_v48 = vpop.permute.xlu1 %596 }
 0x3cf   :  { %798 = vmatprep.subr.bf16.mxu0 %v911_v11  ;;  %v494_v41 = vmul.f32 %v876_v39, %v1032_v54 }
 0x3d0   :  { %v397_v31 = vpack.c.bf16 %v396_v27, %v395_v28 }
 0x3d2   :  { %799 = vmatpush3.bf16.msra.mxu0 %v403_v29 }
 0x3d3   :  { %804 = vmatprep.subr.bf16.mxu0 %v911_v11 }
 0x3d5   :  { %801 = vmatmul.mubr.msk.bf16.vlgmr.msra.gmra.mrb[8].mxu0 %vm281_vm5, %v397_v31 }
 0x3d6   :  { %805 = vmatpush3.bf16.msra.mxu0 %v498_v30  ;;  %808 = vmatprep.mubr.msk.bf16.mxu0 %vm920_vm12, %v911_v11 }
 0x3d7   :  { %806 = vmatprep.subr.bf16.mxu0 %v911_v11 }
 0x3da   :  { %807 = vmatpush3.bf16.msra.mxu0 %v500_v32 }
 0x3db   :  { %812 = vmatprep.subr.bf16.mxu0 %v911_v11 }
 0x3f4   :  { %v489_v34 = vpop.xlane.xlu0 %488 }
 0x3f5   :  { %v491_v35 = vmax.f32 %v489_v34, 1e-30 }
 0x3f7   :  { %877 = vrcp.f32 %v491_v35 }
 0x3f8   :  { %v586_v36 = vpop.xlane.xlu0 %585 }
 0x3f9   :  { %v588_v38 = vmax.f32 %v586_v36, 1e-30 }
 0x3fb   :  { %879 = vrcp.f32 %v588_v38 }
 0x3fc   :  { %881 = vrcp.f32 %v587_v37  ;;  %v595_v45 = vpop.permute.xlu0 %594 }
 0x401   :  { %v878_v40 = vpop.eup %877 }
 0x402   :  { %v495_v42 = vmul.f32 %v878_v40, %v864_v5 }
 0x404   :  { %v496_v43 = vpack.c.bf16 %v495_v42, %v494_v41 }
 0x405   :  { %v880_v44 = vpop.eup %879 }
 0x406   :  { %809 = vmatmul.mubr.msk.bf16.vlgmr.msra.gmra.mrb[12].mxu0 %vm281_vm5, %v496_v43  ;;  %v882_v46 = vpop.eup %881  ;;  %v592_v47 = vmul.f32 %v880_v44, %v1048_v7 }
 0x407   :  { %813 = vmatpush3.bf16.msra.mxu0 %v595_v45  ;;  %816 = vmatprep.mubr.msk.bf16.mxu0 %vm920_vm12, %v911_v11  ;;  %v591_v49 = vmul.f32 %v882_v46, %v1036_v56 }
 0x408   :  { %814 = vmatprep.subr.bf16.mxu0 %v911_v11 }
 0x409   :  { %v593_v50 = vpack.c.bf16 %v592_v47, %v591_v49 }
 0x40b   :  { %815 = vmatpush3.bf16.msra.mxu0 %v597_v48 }
 0x40e   :  { %817 = vmatmul.mubr.msk.bf16.vlgmr.msra.gmra.mrb[16].mxu0 %vm281_vm5, %v593_v50 }
 0x4a0   :  { %v344_v51 = vpop.f32.mrb[4].mxu0 }
 0x4a1   :  { %v794_v52 = vpop.f32.mrb[5].mxu0 }
 0x4a2   :  { %v347_v53 = vpop.f32.mrb[6].mxu0 }
 0x4a3   :  { %v795_v54 = vpop.f32.mrb[7].mxu0 }
 0x4a8   :  { %v443_v55 = vpop.f32.mrb[8].mxu0 }
 0x4a9   :  { %646 = vrot.lane.b32.xlu0 %v443_v55, %s919_s15  ;;  %v802_v57 = vpop.f32.mrb[9].mxu0 }
 0x4aa   :  { %v446_v58 = vpop.f32.mrb[10].mxu0 }
 0x4ab   :  { %648 = vrot.lane.b32.xlu1 %v446_v58, %s919_s15  ;;  %v803_v59 = vpop.f32.mrb[11].mxu0 }
 0x4d9   :  { %v540_v11 = vpop.f32.mrb[12].mxu0 }
 0x4da   :  { %654 = vrot.lane.b32.xlu0 %v540_v11, %s918_s14  ;;  %v810_v56 = vpop.f32.mrb[13].mxu0 }
 0x4db   :  { %v543_v60 = vpop.f32.mrb[14].mxu0 }
 0x4dc   :  { %656 = vrot.lane.b32.xlu1 %v543_v60, %s918_s14  ;;  %v811_v61 = vpop.f32.mrb[15].mxu0 }
 0x4e1   :  { %v637_v62 = vpop.f32.mrb[16].mxu0 }
 0x4e2   :  { %662 = vrot.lane.b32.xlu0 %v637_v62, %s917_s4  ;;  %v818_v0 = vpop.f32.mrb[17].mxu0 }
 0x4e3   :  { %v640_v1 = vpop.f32.mrb[18].mxu0 }
 0x4e4   :  { %664 = vrot.lane.b32.xlu1 %v640_v1, %s917_s4  ;;  %v819_v2 = vpop.f32.mrb[19].mxu0 }
 0x51b   :  { %v647_v3 = vpop.permute.xlu0 %646 }
 0x51c   :  { %v668_v7 = vsel %vm281_vm5, %v344_v51, %v647_v3 }
 0x51d   :  { %v649_v4 = vpop.permute.xlu1 %648 }
 0x51e   :  { %v669_v9 = vsel %vm281_vm5, %v347_v53, %v649_v4 }
 0x54c   :  { %v655_v5 = vpop.permute.xlu0 %654 }
 0x54d   :  { %v671_v63 = vsel %vm670_vm13, %v668_v7, %v655_v5 }
 0x54e   :  { %v657_v6 = vpop.permute.xlu1 %656 }
 0x54f   :  { %v672_v12 = vsel %vm670_vm13, %v669_v9, %v657_v6 }
 0x554   :  { %v663_v8 = vpop.permute.xlu0 %662 }
 0x555   :  { %v674_v10 = vsel %vm673_vm14, %v671_v63, %v663_v8 }
 0x556   :  { %v683_v13 = vadd.f32 %v730_v15, %v674_v10  ;;  %v665_v14 = vpop.permute.xlu1 %664 }
 0x557   :  { %v675_v16 = vsel %vm673_vm14, %v672_v12, %v665_v14 }
 0x558   :  { %v687_v18 = vmul.f32 1.442695, %v683_v13  ;;  %v684_v19 = vadd.f32 %v730_v15, %v675_v16  ;;  %vm685_vm15 = vcmp.gt.f32.partialorder %v683_v13, 0.0 }
 0x55a   :  { %883 = vpow2.f32 %v687_v18  ;;  %v689_v20 = vmul.f32 1.442695, %v684_v19  ;;  %vm686_vm0 = vcmp.gt.f32.partialorder %v684_v19, 0.0 }
 0x55c   :  { %885 = vpow2.f32 %v689_v20 }
 0x564   :  { %v884_v21 = vpop.eup %883 }
 0x565   :  { %v731_v22 = vadd.f32 -1.0, %v884_v21 }
 0x566   :  { %v886_v23 = vpop.eup %885 }
 0x567   :  { %v693_v17 = vsel %vm685_vm15, %v683_v13, %v731_v22  ;;  %v732_v24 = vadd.f32 -1.0, %v886_v23 }
 0x568   :  { %695 = vst [vmem:[#allocation2] sm:$0xff] %v693_v17 }
 0x569   :  { %v694_v25 = vsel %vm686_vm0, %v684_v19, %v732_v24 }
 0x56a   :  { %696 = vst [vmem:[#allocation2 + $0x8] sm:$0xff] %v694_v25 }
 0x56b   :  { %898 = shalt.err (!%p895_p4)
}
 0x56c   :  { %s899_s22 = scalar_lea.hbm %s1102_s5, 256 }
 0x56d   :  { %p900_p5 = scmp.ne.s32.totalorder %s1102_s5, %s899_s22  ;;  %p903_p6 = scmp.lt.u32.totalorder %s899_s22, %s1102_s5 }
 0x56f   :  { %p905_p7 = pnand %p903_p6, %p900_p5 }
 0x571   :  { %908 = shalt.err (!%p905_p7)
}
 0x572   :  { %s922_s27 = smov 128   ;;  %s923_s1 = smov 8  }
 0x573   :  { %708 = dma.vmem_to_hbm [thread:$0]  %s703_s19, 256, %s1102_s5, [#allocation3], %s922_s27, %s922_s27, %s923_s1  }
 0x574   :  { %909 = dma.done.wait [#allocation3], 256  }
 0x575   :  { %910 = vsyncadd [#allocation3], 4294967040 }
 0x576   :  { %712 = vsyncpa [#allocation3], 1 }

</bundles_post_ra>
